<compile_context>
chip_gen: v7x
topology: tpu7x:2x2x1
jax: 0.10.0
libtpu: 0.0.40
codegen_flags: <defaults>
</compile_context>

<pallas_src>
import functools

import jax
import jax.numpy as jnp
from jax.experimental import pallas as pl
from jax.experimental.pallas import tpu as pltpu


# ---------------------------------------------------------------------------
# 2-layer wavefront kernel (the shipped config).
# ---------------------------------------------------------------------------
def lstm2_wavefront_kernel(x_ref, w0_ref, bpad_ref, wrec_ref, wout_ref,
                           bout_ref, o_ref, gxb_ref, *, seq_len, batch,
                           hidden):
    S, B, H = seq_len, batch, hidden

    # Hoisted input projection for BOTH layers' additive gate terms (+ merged
    # biases), all timesteps at once, parked in VMEM scratch (not SSA values).
    # Layer-0 columns get x(t) @ wih0 + b0; layer-1 columns get just b1.
    gxb_ref[...] = (
        jnp.dot(x_ref[...].astype(jnp.bfloat16), w0_ref[...],
                preferred_element_type=jnp.float32)
        + bpad_ref[...]
    )

    # Lane mask selecting the layer-0 half of the (B, 2H) state.
    keep_l0 = (jax.lax.broadcasted_iota(jnp.int32, (B, 2 * H), 1) < H
               ).astype(jnp.float32)

    def fused_cell(gcat, c_cat):
        # gcat: (B, 8H) in layout [i0 i1 | f0 f1 | g0 g1 | o0 o1];
        # c_cat/h_cat: (B, 2H) = [layer0 | layer1].  One EUP pass, one
        # full-width elementwise update covers both layers.
        sg = jax.nn.sigmoid(gcat)
        th = jnp.tanh(gcat)
        i = sg[:, 0 * H:2 * H]
        f = sg[:, 2 * H:4 * H]
        g = th[:, 4 * H:6 * H]
        o = sg[:, 6 * H:8 * H]
        c_new = f * c_cat + i * g
        h_new = o * jnp.tanh(c_new)
        return h_new, c_new

    # Prologue (layer0 @ t=0): initial h/c are zero, so no recurrent matmul.
    h_cat, c_cat = fused_cell(gxb_ref[0:B, :],
                              jnp.zeros((B, 2 * H), jnp.float32))
    h_cat = h_cat * keep_l0          # layer-1 half of the prologue is invalid
    c_cat = c_cat * keep_l0

    # Wavefront: step t advances layer1 to time t and layer0 to time t+1 with
    # a single dependent (B,2H) @ (2H,8H) bf16 matmul.
    def wavefront_step(t, carry):
        h_cat, c_cat = carry
        base = pl.multiple_of((t + 1) * B, B)
        gcat = (
            jnp.dot(h_cat.astype(jnp.bfloat16), wrec_ref[...],
                    preferred_element_type=jnp.float32)
            + gxb_ref[pl.ds(base, B), :]
        )
        return fused_cell(gcat, c_cat)

    h_cat, c_cat = jax.lax.fori_loop(0, S, wavefront_step, (h_cat, c_cat),
                                     unroll=True)
    # After S wavefront steps layer1 has reached time S-1; layer0 overran into
    # the zero-padded timestep S and is simply discarded.

    # Head: relu -> Linear(H,1) -> sigmoid as a VPU/XLU reduction.
    h_last = h_cat[:, H:2 * H]                                  # h1(S-1)
    h_relu = jnp.maximum(h_last, 0.0)
    z = jnp.sum(h_relu * wout_ref[...], axis=-1, keepdims=True) + bout_ref[0, 0]
    o_ref[...] = jax.nn.sigmoid(z)


# ---------------------------------------------------------------------------
# Generic fallback kernel (num_layers != 2): sequential layers per timestep,
# deep-layer wih/whh matmuls fused via a host-side (2H, 4H) concat weight.
# ---------------------------------------------------------------------------
def lstm_generic_kernel(*refs, num_layers, seq_len, batch, hidden):
    S, B, H = seq_len, batch, hidden
    x_ref, wih0_ref, b0_ref, whh0_ref = refs[0:4]
    deep_refs = [refs[4 + 2 * (l - 1): 4 + 2 * l] for l in range(1, num_layers)]
    wout_ref = refs[4 + 2 * (num_layers - 1)]
    bout_ref = refs[5 + 2 * (num_layers - 1)]
    o_ref = refs[6 + 2 * (num_layers - 1)]
    gx_ref = refs[7 + 2 * (num_layers - 1)]            # VMEM scratch (S*B, 4H)

    gx_ref[...] = (
        jnp.dot(x_ref[...].astype(jnp.bfloat16), wih0_ref[...],
                preferred_element_type=jnp.float32)
        + b0_ref[...]
    )

    def cell(gates, c_prev):
        sg = jax.nn.sigmoid(gates)
        th = jnp.tanh(gates)
        i = sg[:, 0 * H:1 * H]
        f = sg[:, 1 * H:2 * H]
        g = th[:, 2 * H:3 * H]
        o = sg[:, 3 * H:4 * H]
        c_new = f * c_prev + i * g
        return o * jnp.tanh(c_new), c_new

    hs = [jnp.zeros((B, H), jnp.float32) for _ in range(num_layers)]
    cs = [jnp.zeros((B, H), jnp.float32) for _ in range(num_layers)]
    for t in range(S):
        gates0 = gx_ref[t * B:(t + 1) * B, :] + jnp.dot(
            hs[0].astype(jnp.bfloat16), whh0_ref[...],
            preferred_element_type=jnp.float32)
        hs[0], cs[0] = cell(gates0, cs[0])
        for l in range(1, num_layers):
            wcat_ref, bl_ref = deep_refs[l - 1]
            hcat = jnp.concatenate([hs[l - 1], hs[l]], axis=-1)
            gates = jnp.dot(hcat.astype(jnp.bfloat16), wcat_ref[...],
                            preferred_element_type=jnp.float32) + bl_ref[...]
            hs[l], cs[l] = cell(gates, cs[l])

    h_relu = jnp.maximum(hs[-1], 0.0)
    z = jnp.sum(h_relu * wout_ref[...], axis=-1, keepdims=True) + bout_ref[0, 0]
    o_ref[...] = jax.nn.sigmoid(z)


# ---------------------------------------------------------------------------
# Host-side parameter fusion (wrapper-time, plain JAX glue).
# ---------------------------------------------------------------------------
def _interleave_cols(a, b, H):
    """a, b: (..., 4H) -> (..., 8H) in layout [ia ib | fa fb | ga gb | oa ob]."""
    parts = []
    for g in range(4):
        parts.append(a[..., g * H:(g + 1) * H])
        parts.append(b[..., g * H:(g + 1) * H])
    return jnp.concatenate(parts, axis=-1)


def build_wavefront_params(layers, hidden):
    """layers: [(wih_t (D_in,4H), whh_t (H,4H), b (1,4H))] for exactly 2 layers."""
    H = hidden
    (wih0, whh0, b0), (wih1, whh1, b1) = layers
    D = wih0.shape[0]
    zeros_d = jnp.zeros((D, 4 * H), jnp.float32)
    zeros_h = jnp.zeros((H, 4 * H), jnp.float32)
    w0_pad = _interleave_cols(wih0, zeros_d, H).astype(jnp.bfloat16)   # (D, 8H)
    b_pad = _interleave_cols(b0, b1, H)                                # (1, 8H)
    w_rec = jnp.concatenate(
        [_interleave_cols(whh0, wih1, H),       # rows driven by h0(t)
         _interleave_cols(zeros_h, whh1, H)],   # rows driven by h1(t-1)
        axis=0,
    ).astype(jnp.bfloat16)                                             # (2H, 8H)
    return w0_pad, b_pad, w_rec


def build_generic_params(layers, hidden):
    wih0, whh0, b0 = layers[0]
    args = [wih0.astype(jnp.bfloat16), b0, whh0.astype(jnp.bfloat16)]
    for (wih, whh, b) in layers[1:]:
        wcat = jnp.concatenate([wih, whh], axis=0).astype(jnp.bfloat16)  # (2H,4H)
        args += [wcat, b]
    return args


# ---------------------------------------------------------------------------
# Wrappers around pallas_call.
# ---------------------------------------------------------------------------
_VMEM_SPEC = pl.BlockSpec(memory_space=pltpu.MemorySpace.VMEM)
_SMEM_SPEC = pl.BlockSpec(memory_space=pltpu.MemorySpace.SMEM)


def lstm2_wavefront_forward(x, w0_pad, b_pad, w_rec, w_out, b_out, *, hidden):
    S, B, D = x.shape
    H = hidden
    B_pad = ((B + 7) // 8) * 8          # pad batch to a full sublane group
    if B_pad != B:
        x = jnp.pad(x, ((0, 0), (0, B_pad - B), (0, 0)))
    # Extra zero timestep so the last wavefront step has a gate block to read.
    x = jnp.concatenate([x, jnp.zeros((1, B_pad, D), x.dtype)], axis=0)
    x2d = x.reshape((S + 1) * B_pad, D)

    kernel = functools.partial(lstm2_wavefront_kernel,
                               seq_len=S, batch=B_pad, hidden=H)
    out = pl.pallas_call(
        kernel,
        out_shape=jax.ShapeDtypeStruct((B_pad, 1), jnp.float32),
        in_specs=[_VMEM_SPEC] * 5 + [_SMEM_SPEC],
        out_specs=_VMEM_SPEC,
        scratch_shapes=[pltpu.VMEM(((S + 1) * B_pad, 8 * H), jnp.float32)],
    )(x2d, w0_pad, b_pad, w_rec, w_out, b_out)
    return out[:B]


def lstm_generic_forward(x, gen_args, w_out, b_out, *, hidden, num_layers):
    S, B, D = x.shape
    B_pad = ((B + 7) // 8) * 8
    if B_pad != B:
        x = jnp.pad(x, ((0, 0), (0, B_pad - B), (0, 0)))
    x2d = x.reshape(S * B_pad, D)

    kernel = functools.partial(lstm_generic_kernel, num_layers=num_layers,
                               seq_len=S, batch=B_pad, hidden=hidden)
    n_in = 1 + len(gen_args) + 2
    out = pl.pallas_call(
        kernel,
        out_shape=jax.ShapeDtypeStruct((B_pad, 1), jnp.float32),
        in_specs=[_VMEM_SPEC] * (n_in - 1) + [_SMEM_SPEC],
        out_specs=_VMEM_SPEC,
        scratch_shapes=[pltpu.VMEM((S * B_pad, 4 * hidden), jnp.float32)],
    )(x2d, *gen_args, w_out, b_out)
    return out[:B]


# ---------------------------------------------------------------------------
# Model wrapper (parameter setup is plain JAX glue)
# ---------------------------------------------------------------------------
class LSTMModel:
    def __init__(self, config, key):
        self.hidden_dim = config["hidden"]
        self.input_size = config["embedding_dim"] + 1
        self.num_layers = config["lstm_layers"]

        H = self.hidden_dim
        k = 1.0 / jnp.sqrt(jnp.float32(H))  # PyTorch default uniform(-k, k)

        self.layers = []
        for layer in range(self.num_layers):
            d_in = self.input_size if layer == 0 else H
            key, k1, k2, k3, k4 = jax.random.split(key, 5)
            w_ih = jax.random.uniform(k1, (4 * H, d_in), jnp.float32, -k, k)
            w_hh = jax.random.uniform(k2, (4 * H, H), jnp.float32, -k, k)
            b_ih = jax.random.uniform(k3, (4 * H,), jnp.float32, -k, k)
            b_hh = jax.random.uniform(k4, (4 * H,), jnp.float32, -k, k)
            self.layers.append(
                (w_ih.T, w_hh.T, (b_ih + b_hh).reshape(1, 4 * H))
            )

        key, k5, k6 = jax.random.split(key, 3)
        self.w_out = jax.random.uniform(k5, (1, H), jnp.float32, -k, k)
        self.b_out = jax.random.uniform(k6, (1,), jnp.float32, -k, k)

        # Fuse weights for the kernel at wrapper time (bf16 MXU operands).
        if self.num_layers == 2:
            self._wave = build_wavefront_params(self.layers, H)
        else:
            self._gen = build_generic_params(self.layers, H)

    def __call__(self, x):
        # x: (seq_len, batch, embedding_dim + 1) -> (batch, 1)
        b_out = self.b_out.reshape(1, 1)
        if self.num_layers == 2:
            w0_pad, b_pad, w_rec = self._wave
            return lstm2_wavefront_forward(x, w0_pad, b_pad, w_rec,
                                           self.w_out, b_out,
                                           hidden=self.hidden_dim)
        return lstm_generic_forward(x, self._gen, self.w_out, b_out,
                                    hidden=self.hidden_dim,
                                    num_layers=self.num_layers)


# ---------------------------------------------------------------------------
# Pure-JAX f32 reference for sanity checking
# ---------------------------------------------------------------------------
def reference_forward(model, x):
    H = model.hidden_dim
    out = x
    for (wih_t, whh_t, b) in model.layers:
        S, B, _ = out.shape
        h = jnp.zeros((B, H), jnp.float32)
        c = jnp.zeros((B, H), jnp.float32)
        ys = []
        for t in range(S):
            gates = out[t] @ wih_t + h @ whh_t + b
            i = jax.nn.sigmoid(gates[:, 0 * H:1 * H])
            f = jax.nn.sigmoid(gates[:, 1 * H:2 * H])
            g = jnp.tanh(gates[:, 2 * H:3 * H])
            o = jax.nn.sigmoid(gates[:, 3 * H:4 * H])
            c = f * c + i * g
            h = o * jnp.tanh(c)
            ys.append(h)
        out = jnp.stack(ys, axis=0)
    h_last = jnp.maximum(out[-1], 0.0)
    return jax.nn.sigmoid(h_last @ model.w_out.T + model.b_out)


if __name__ == "__main__":
    config = {"embedding_dim": 15, "hidden": 32, "lstm_layers": 2}
    seq_len, batch = 8, 4

    key = jax.random.PRNGKey(0)
    key, kx, kp = jax.random.split(key, 3)

    model = LSTMModel(config, kp)
    x = jax.random.normal(
        kx, (seq_len, batch, config["embedding_dim"] + 1), jnp.float32
    )

    out = jax.block_until_ready(model(x))
    ref = reference_forward(model, x)

    assert out.shape == (batch, 1), out.shape
    # bf16 MXU operands (f32 accumulation) -> tolerance relaxed vs f32 ref.
    assert jnp.allclose(out, ref, atol=5e-3, rtol=0.0), (out, ref)

    print("KERNEL_OK")
</pallas_src>

<mosaic_0001>
module attributes {stable_mosaic.version = 11 : i64} {
  func.func @lstm2_wavefront_kernel(%arg0: memref<72x16xf32, #tpu.memory_space<vmem>>, %arg1: memref<16x256xbf16, #tpu.memory_space<vmem>>, %arg2: memref<1x256xf32, #tpu.memory_space<vmem>>, %arg3: memref<64x256xbf16, #tpu.memory_space<vmem>>, %arg4: memref<1x32xf32, #tpu.memory_space<vmem>>, %arg5: memref<1x1xf32, #tpu.memory_space<smem>>, %arg6: memref<8x1xf32, #tpu.memory_space<vmem>>, %arg7: memref<72x256xf32, #tpu.memory_space<vmem>>) attributes {dimension_semantics = [], scalar_prefetch = 0 : i64, scratch_operands = 1 : i64, tpu.core_type = #tpu.core_type<tc>} {
    %c0 = arith.constant 0 : index
    %c0_0 = arith.constant 0 : index
    %0 = vector.load %arg0[%c0, %c0_0] : memref<72x16xf32, #tpu.memory_space<vmem>>, vector<72x16xf32>
    %1 = arith.truncf %0 : vector<72x16xf32> to vector<72x16xbf16>
    %c0_1 = arith.constant 0 : index
    %c0_2 = arith.constant 0 : index
    %2 = vector.load %arg1[%c0_1, %c0_2] : memref<16x256xbf16, #tpu.memory_space<vmem>>, vector<16x256xbf16>
    %cst = arith.constant dense<0.000000e+00> : vector<72x256xf32>
    %3 = tpu.matmul %1, %2, %cst {dimension_numbers = #tpu.dot_dimension_numbers<[1], [0], [0], [1], [0, 0, 1, 1], [], []>} : vector<72x16xbf16>, vector<16x256xbf16>, vector<72x256xf32> -> vector<72x256xf32>
    %c0_3 = arith.constant 0 : index
    %c0_4 = arith.constant 0 : index
    %4 = vector.load %arg2[%c0_3, %c0_4] : memref<1x256xf32, #tpu.memory_space<vmem>>, vector<1x256xf32>
    %5 = vector.broadcast %4 : vector<1x256xf32> to vector<72x256xf32>
    %6 = arith.addf %3, %5 : vector<72x256xf32>
    %c0_5 = arith.constant 0 : index
    %c0_6 = arith.constant 0 : index
    %7 = vector.load %arg7[%c0_5, %c0_6] : memref<72x256xf32, #tpu.memory_space<vmem>>, vector<72x256xf32>
    tpu.vector_store %arg7[%c0_5, %c0_6], %6 {strides = array<i32>} : memref<72x256xf32, #tpu.memory_space<vmem>>, vector<72x256xf32>,
    %8 = tpu.iota {dimensions = array<i32: 1>} : vector<8x64xi32>
    %c32_i32 = arith.constant 32 : i32
    %9 = vector.broadcast %c32_i32 : i32 to vector<8x64xi32>
    %10 = arith.cmpi slt, %8, %9 : vector<8x64xi32>
    %11 = arith.extui %10 : vector<8x64xi1> to vector<8x64xi32>
    %12 = arith.sitofp %11 : vector<8x64xi32> to vector<8x64xf32>
    %c0_7 = arith.constant 0 : index
    %c0_8 = arith.constant 0 : index
    %13 = vector.load %arg7[%c0_7, %c0_8] : memref<72x256xf32, #tpu.memory_space<vmem>>, vector<8x256xf32>
    %cst_9 = arith.constant 0.000000e+00 : f32
    %14 = vector.broadcast %cst_9 : f32 to vector<8x64xf32>
    %15 = arith.negf %13 : vector<8x256xf32>
    %16 = math.exp %15 : vector<8x256xf32>
    %cst_10 = arith.constant 1.000000e+00 : f32
    %17 = vector.broadcast %cst_10 : f32 to vector<8x256xf32>
    %18 = arith.addf %17, %16 : vector<8x256xf32>
    %19 = arith.divf %17, %18 : vector<8x256xf32>
    %20 = math.tanh %13 : vector<8x256xf32>
    %21 = vector.extract_strided_slice %19 {offsets = [0, 0], sizes = [8, 64], strides = [1, 1]} : vector<8x256xf32> to vector<8x64xf32>
    %22 = vector.extract_strided_slice %19 {offsets = [0, 64], sizes = [8, 64], strides = [1, 1]} : vector<8x256xf32> to vector<8x64xf32>
    %23 = vector.extract_strided_slice %20 {offsets = [0, 128], sizes = [8, 64], strides = [1, 1]} : vector<8x256xf32> to vector<8x64xf32>
    %24 = vector.extract_strided_slice %19 {offsets = [0, 192], sizes = [8, 64], strides = [1, 1]} : vector<8x256xf32> to vector<8x64xf32>
    %25 = arith.mulf %22, %14 : vector<8x64xf32>
    %26 = arith.mulf %21, %23 : vector<8x64xf32>
    %27 = arith.addf %25, %26 : vector<8x64xf32>
    %28 = math.tanh %27 : vector<8x64xf32>
    %29 = arith.mulf %24, %28 : vector<8x64xf32>
    %30 = arith.mulf %29, %12 : vector<8x64xf32>
    %31 = arith.mulf %27, %12 : vector<8x64xf32>
    %c0_i32 = arith.constant 0 : i32
    %c1_i32 = arith.constant 1 : i32
    %32 = arith.addi %c0_i32, %c1_i32 : i32
    %c8_i32 = arith.constant 8 : i32
    %33 = arith.muli %32, %c8_i32 : i32
    %34 = tpu.assume_multiple %33, 8 : i32
    %35 = arith.truncf %30 : vector<8x64xf32> to vector<8x64xbf16>
    %c0_11 = arith.constant 0 : index
    %c0_12 = arith.constant 0 : index
    %36 = vector.load %arg3[%c0_11, %c0_12] : memref<64x256xbf16, #tpu.memory_space<vmem>>, vector<64x256xbf16>
    %cst_13 = arith.constant dense<0.000000e+00> : vector<8x256xf32>
    %37 = tpu.matmul %35, %36, %cst_13 {dimension_numbers = #tpu.dot_dimension_numbers<[1], [0], [0], [1], [0, 0, 1, 1], [], []>} : vector<8x64xbf16>, vector<64x256xbf16>, vector<8x256xf32> -> vector<8x256xf32>
    %38 = arith.index_cast %34 : i32 to index
    %c0_14 = arith.constant 0 : index
    %39 = vector.load %arg7[%38, %c0_14] : memref<72x256xf32, #tpu.memory_space<vmem>>, vector<8x256xf32>
    %40 = arith.addf %37, %39 : vector<8x256xf32>
    %41 = arith.negf %40 : vector<8x256xf32>
    %42 = math.exp %41 : vector<8x256xf32>
    %cst_15 = arith.constant 1.000000e+00 : f32
    %43 = vector.broadcast %cst_15 : f32 to vector<8x256xf32>
    %44 = arith.addf %43, %42 : vector<8x256xf32>
    %45 = arith.divf %43, %44 : vector<8x256xf32>
    %46 = math.tanh %40 : vector<8x256xf32>
    %47 = vector.extract_strided_slice %45 {offsets = [0, 0], sizes = [8, 64], strides = [1, 1]} : vector<8x256xf32> to vector<8x64xf32>
    %48 = vector.extract_strided_slice %45 {offsets = [0, 64], sizes = [8, 64], strides = [1, 1]} : vector<8x256xf32> to vector<8x64xf32>
    %49 = vector.extract_strided_slice %46 {offsets = [0, 128], sizes = [8, 64], strides = [1, 1]} : vector<8x256xf32> to vector<8x64xf32>
    %50 = vector.extract_strided_slice %45 {offsets = [0, 192], sizes = [8, 64], strides = [1, 1]} : vector<8x256xf32> to vector<8x64xf32>
    %51 = arith.mulf %48, %31 : vector<8x64xf32>
    %52 = arith.mulf %47, %49 : vector<8x64xf32>
    %53 = arith.addf %51, %52 : vector<8x64xf32>
    %54 = math.tanh %53 : vector<8x64xf32>
    %55 = arith.mulf %50, %54 : vector<8x64xf32>
    %c1_i32_16 = arith.constant 1 : i32
    %c1_i32_17 = arith.constant 1 : i32
    %56 = arith.addi %c1_i32_16, %c1_i32_17 : i32
    %c8_i32_18 = arith.constant 8 : i32
    %57 = arith.muli %56, %c8_i32_18 : i32
    %58 = tpu.assume_multiple %57, 8 : i32
    %59 = arith.truncf %55 : vector<8x64xf32> to vector<8x64xbf16>
    %c0_19 = arith.constant 0 : index
    %c0_20 = arith.constant 0 : index
    %60 = vector.load %arg3[%c0_19, %c0_20] : memref<64x256xbf16, #tpu.memory_space<vmem>>, vector<64x256xbf16>
    %cst_21 = arith.constant dense<0.000000e+00> : vector<8x256xf32>
    %61 = tpu.matmul %59, %60, %cst_21 {dimension_numbers = #tpu.dot_dimension_numbers<[1], [0], [0], [1], [0, 0, 1, 1], [], []>} : vector<8x64xbf16>, vector<64x256xbf16>, vector<8x256xf32> -> vector<8x256xf32>
    %62 = arith.index_cast %58 : i32 to index
    %c0_22 = arith.constant 0 : index
    %63 = vector.load %arg7[%62, %c0_22] : memref<72x256xf32, #tpu.memory_space<vmem>>, vector<8x256xf32>
    %64 = arith.addf %61, %63 : vector<8x256xf32>
    %65 = arith.negf %64 : vector<8x256xf32>
    %66 = math.exp %65 : vector<8x256xf32>
    %cst_23 = arith.constant 1.000000e+00 : f32
    %67 = vector.broadcast %cst_23 : f32 to vector<8x256xf32>
    %68 = arith.addf %67, %66 : vector<8x256xf32>
    %69 = arith.divf %67, %68 : vector<8x256xf32>
    %70 = math.tanh %64 : vector<8x256xf32>
    %71 = vector.extract_strided_slice %69 {offsets = [0, 0], sizes = [8, 64], strides = [1, 1]} : vector<8x256xf32> to vector<8x64xf32>
    %72 = vector.extract_strided_slice %69 {offsets = [0, 64], sizes = [8, 64], strides = [1, 1]} : vector<8x256xf32> to vector<8x64xf32>
    %73 = vector.extract_strided_slice %70 {offsets = [0, 128], sizes = [8, 64], strides = [1, 1]} : vector<8x256xf32> to vector<8x64xf32>
    %74 = vector.extract_strided_slice %69 {offsets = [0, 192], sizes = [8, 64], strides = [1, 1]} : vector<8x256xf32> to vector<8x64xf32>
    %75 = arith.mulf %72, %53 : vector<8x64xf32>
    %76 = arith.mulf %71, %73 : vector<8x64xf32>
    %77 = arith.addf %75, %76 : vector<8x64xf32>
    %78 = math.tanh %77 : vector<8x64xf32>
    %79 = arith.mulf %74, %78 : vector<8x64xf32>
    %c2_i32 = arith.constant 2 : i32
    %c1_i32_24 = arith.constant 1 : i32
    %80 = arith.addi %c2_i32, %c1_i32_24 : i32
    %c8_i32_25 = arith.constant 8 : i32
    %81 = arith.muli %80, %c8_i32_25 : i32
    %82 = tpu.assume_multiple %81, 8 : i32
    %83 = arith.truncf %79 : vector<8x64xf32> to vector<8x64xbf16>
    %c0_26 = arith.constant 0 : index
    %c0_27 = arith.constant 0 : index
    %84 = vector.load %arg3[%c0_26, %c0_27] : memref<64x256xbf16, #tpu.memory_space<vmem>>, vector<64x256xbf16>
    %cst_28 = arith.constant dense<0.000000e+00> : vector<8x256xf32>
    %85 = tpu.matmul %83, %84, %cst_28 {dimension_numbers = #tpu.dot_dimension_numbers<[1], [0], [0], [1], [0, 0, 1, 1], [], []>} : vector<8x64xbf16>, vector<64x256xbf16>, vector<8x256xf32> -> vector<8x256xf32>
    %86 = arith.index_cast %82 : i32 to index
    %c0_29 = arith.constant 0 : index
    %87 = vector.load %arg7[%86, %c0_29] : memref<72x256xf32, #tpu.memory_space<vmem>>, vector<8x256xf32>
    %88 = arith.addf %85, %87 : vector<8x256xf32>
    %89 = arith.negf %88 : vector<8x256xf32>
    %90 = math.exp %89 : vector<8x256xf32>
    %cst_30 = arith.constant 1.000000e+00 : f32
    %91 = vector.broadcast %cst_30 : f32 to vector<8x256xf32>
    %92 = arith.addf %91, %90 : vector<8x256xf32>
    %93 = arith.divf %91, %92 : vector<8x256xf32>
    %94 = math.tanh %88 : vector<8x256xf32>
    %95 = vector.extract_strided_slice %93 {offsets = [0, 0], sizes = [8, 64], strides = [1, 1]} : vector<8x256xf32> to vector<8x64xf32>
    %96 = vector.extract_strided_slice %93 {offsets = [0, 64], sizes = [8, 64], strides = [1, 1]} : vector<8x256xf32> to vector<8x64xf32>
    %97 = vector.extract_strided_slice %94 {offsets = [0, 128], sizes = [8, 64], strides = [1, 1]} : vector<8x256xf32> to vector<8x64xf32>
    %98 = vector.extract_strided_slice %93 {offsets = [0, 192], sizes = [8, 64], strides = [1, 1]} : vector<8x256xf32> to vector<8x64xf32>
    %99 = arith.mulf %96, %77 : vector<8x64xf32>
    %100 = arith.mulf %95, %97 : vector<8x64xf32>
    %101 = arith.addf %99, %100 : vector<8x64xf32>
    %102 = math.tanh %101 : vector<8x64xf32>
    %103 = arith.mulf %98, %102 : vector<8x64xf32>
    %c3_i32 = arith.constant 3 : i32
    %c1_i32_31 = arith.constant 1 : i32
    %104 = arith.addi %c3_i32, %c1_i32_31 : i32
    %c8_i32_32 = arith.constant 8 : i32
    %105 = arith.muli %104, %c8_i32_32 : i32
    %106 = tpu.assume_multiple %105, 8 : i32
    %107 = arith.truncf %103 : vector<8x64xf32> to vector<8x64xbf16>
    %c0_33 = arith.constant 0 : index
    %c0_34 = arith.constant 0 : index
    %108 = vector.load %arg3[%c0_33, %c0_34] : memref<64x256xbf16, #tpu.memory_space<vmem>>, vector<64x256xbf16>
    %cst_35 = arith.constant dense<0.000000e+00> : vector<8x256xf32>
    %109 = tpu.matmul %107, %108, %cst_35 {dimension_numbers = #tpu.dot_dimension_numbers<[1], [0], [0], [1], [0, 0, 1, 1], [], []>} : vector<8x64xbf16>, vector<64x256xbf16>, vector<8x256xf32> -> vector<8x256xf32>
    %110 = arith.index_cast %106 : i32 to index
    %c0_36 = arith.constant 0 : index
    %111 = vector.load %arg7[%110, %c0_36] : memref<72x256xf32, #tpu.memory_space<vmem>>, vector<8x256xf32>
    %112 = arith.addf %109, %111 : vector<8x256xf32>
    %113 = arith.negf %112 : vector<8x256xf32>
    %114 = math.exp %113 : vector<8x256xf32>
    %cst_37 = arith.constant 1.000000e+00 : f32
    %115 = vector.broadcast %cst_37 : f32 to vector<8x256xf32>
    %116 = arith.addf %115, %114 : vector<8x256xf32>
    %117 = arith.divf %115, %116 : vector<8x256xf32>
    %118 = math.tanh %112 : vector<8x256xf32>
    %119 = vector.extract_strided_slice %117 {offsets = [0, 0], sizes = [8, 64], strides = [1, 1]} : vector<8x256xf32> to vector<8x64xf32>
    %120 = vector.extract_strided_slice %117 {offsets = [0, 64], sizes = [8, 64], strides = [1, 1]} : vector<8x256xf32> to vector<8x64xf32>
    %121 = vector.extract_strided_slice %118 {offsets = [0, 128], sizes = [8, 64], strides = [1, 1]} : vector<8x256xf32> to vector<8x64xf32>
    %122 = vector.extract_strided_slice %117 {offsets = [0, 192], sizes = [8, 64], strides = [1, 1]} : vector<8x256xf32> to vector<8x64xf32>
    %123 = arith.mulf %120, %101 : vector<8x64xf32>
    %124 = arith.mulf %119, %121 : vector<8x64xf32>
    %125 = arith.addf %123, %124 : vector<8x64xf32>
    %126 = math.tanh %125 : vector<8x64xf32>
    %127 = arith.mulf %122, %126 : vector<8x64xf32>
    %c4_i32 = arith.constant 4 : i32
    %c1_i32_38 = arith.constant 1 : i32
    %128 = arith.addi %c4_i32, %c1_i32_38 : i32
    %c8_i32_39 = arith.constant 8 : i32
    %129 = arith.muli %128, %c8_i32_39 : i32
    %130 = tpu.assume_multiple %129, 8 : i32
    %131 = arith.truncf %127 : vector<8x64xf32> to vector<8x64xbf16>
    %c0_40 = arith.constant 0 : index
    %c0_41 = arith.constant 0 : index
    %132 = vector.load %arg3[%c0_40, %c0_41] : memref<64x256xbf16, #tpu.memory_space<vmem>>, vector<64x256xbf16>
    %cst_42 = arith.constant dense<0.000000e+00> : vector<8x256xf32>
    %133 = tpu.matmul %131, %132, %cst_42 {dimension_numbers = #tpu.dot_dimension_numbers<[1], [0], [0], [1], [0, 0, 1, 1], [], []>} : vector<8x64xbf16>, vector<64x256xbf16>, vector<8x256xf32> -> vector<8x256xf32>
    %134 = arith.index_cast %130 : i32 to index
    %c0_43 = arith.constant 0 : index
    %135 = vector.load %arg7[%134, %c0_43] : memref<72x256xf32, #tpu.memory_space<vmem>>, vector<8x256xf32>
    %136 = arith.addf %133, %135 : vector<8x256xf32>
    %137 = arith.negf %136 : vector<8x256xf32>
    %138 = math.exp %137 : vector<8x256xf32>
    %cst_44 = arith.constant 1.000000e+00 : f32
    %139 = vector.broadcast %cst_44 : f32 to vector<8x256xf32>
    %140 = arith.addf %139, %138 : vector<8x256xf32>
    %141 = arith.divf %139, %140 : vector<8x256xf32>
    %142 = math.tanh %136 : vector<8x256xf32>
    %143 = vector.extract_strided_slice %141 {offsets = [0, 0], sizes = [8, 64], strides = [1, 1]} : vector<8x256xf32> to vector<8x64xf32>
    %144 = vector.extract_strided_slice %141 {offsets = [0, 64], sizes = [8, 64], strides = [1, 1]} : vector<8x256xf32> to vector<8x64xf32>
    %145 = vector.extract_strided_slice %142 {offsets = [0, 128], sizes = [8, 64], strides = [1, 1]} : vector<8x256xf32> to vector<8x64xf32>
    %146 = vector.extract_strided_slice %141 {offsets = [0, 192], sizes = [8, 64], strides = [1, 1]} : vector<8x256xf32> to vector<8x64xf32>
    %147 = arith.mulf %144, %125 : vector<8x64xf32>
    %148 = arith.mulf %143, %145 : vector<8x64xf32>
    %149 = arith.addf %147, %148 : vector<8x64xf32>
    %150 = math.tanh %149 : vector<8x64xf32>
    %151 = arith.mulf %146, %150 : vector<8x64xf32>
    %c5_i32 = arith.constant 5 : i32
    %c1_i32_45 = arith.constant 1 : i32
    %152 = arith.addi %c5_i32, %c1_i32_45 : i32
    %c8_i32_46 = arith.constant 8 : i32
    %153 = arith.muli %152, %c8_i32_46 : i32
    %154 = tpu.assume_multiple %153, 8 : i32
    %155 = arith.truncf %151 : vector<8x64xf32> to vector<8x64xbf16>
    %c0_47 = arith.constant 0 : index
    %c0_48 = arith.constant 0 : index
    %156 = vector.load %arg3[%c0_47, %c0_48] : memref<64x256xbf16, #tpu.memory_space<vmem>>, vector<64x256xbf16>
    %cst_49 = arith.constant dense<0.000000e+00> : vector<8x256xf32>
    %157 = tpu.matmul %155, %156, %cst_49 {dimension_numbers = #tpu.dot_dimension_numbers<[1], [0], [0], [1], [0, 0, 1, 1], [], []>} : vector<8x64xbf16>, vector<64x256xbf16>, vector<8x256xf32> -> vector<8x256xf32>
    %158 = arith.index_cast %154 : i32 to index
    %c0_50 = arith.constant 0 : index
    %159 = vector.load %arg7[%158, %c0_50] : memref<72x256xf32, #tpu.memory_space<vmem>>, vector<8x256xf32>
    %160 = arith.addf %157, %159 : vector<8x256xf32>
    %161 = arith.negf %160 : vector<8x256xf32>
    %162 = math.exp %161 : vector<8x256xf32>
    %cst_51 = arith.constant 1.000000e+00 : f32
    %163 = vector.broadcast %cst_51 : f32 to vector<8x256xf32>
    %164 = arith.addf %163, %162 : vector<8x256xf32>
    %165 = arith.divf %163, %164 : vector<8x256xf32>
    %166 = math.tanh %160 : vector<8x256xf32>
    %167 = vector.extract_strided_slice %165 {offsets = [0, 0], sizes = [8, 64], strides = [1, 1]} : vector<8x256xf32> to vector<8x64xf32>
    %168 = vector.extract_strided_slice %165 {offsets = [0, 64], sizes = [8, 64], strides = [1, 1]} : vector<8x256xf32> to vector<8x64xf32>
    %169 = vector.extract_strided_slice %166 {offsets = [0, 128], sizes = [8, 64], strides = [1, 1]} : vector<8x256xf32> to vector<8x64xf32>
    %170 = vector.extract_strided_slice %165 {offsets = [0, 192], sizes = [8, 64], strides = [1, 1]} : vector<8x256xf32> to vector<8x64xf32>
    %171 = arith.mulf %168, %149 : vector<8x64xf32>
    %172 = arith.mulf %167, %169 : vector<8x64xf32>
    %173 = arith.addf %171, %172 : vector<8x64xf32>
    %174 = math.tanh %173 : vector<8x64xf32>
    %175 = arith.mulf %170, %174 : vector<8x64xf32>
    %c6_i32 = arith.constant 6 : i32
    %c1_i32_52 = arith.constant 1 : i32
    %176 = arith.addi %c6_i32, %c1_i32_52 : i32
    %c8_i32_53 = arith.constant 8 : i32
    %177 = arith.muli %176, %c8_i32_53 : i32
    %178 = tpu.assume_multiple %177, 8 : i32
    %179 = arith.truncf %175 : vector<8x64xf32> to vector<8x64xbf16>
    %c0_54 = arith.constant 0 : index
    %c0_55 = arith.constant 0 : index
    %180 = vector.load %arg3[%c0_54, %c0_55] : memref<64x256xbf16, #tpu.memory_space<vmem>>, vector<64x256xbf16>
    %cst_56 = arith.constant dense<0.000000e+00> : vector<8x256xf32>
    %181 = tpu.matmul %179, %180, %cst_56 {dimension_numbers = #tpu.dot_dimension_numbers<[1], [0], [0], [1], [0, 0, 1, 1], [], []>} : vector<8x64xbf16>, vector<64x256xbf16>, vector<8x256xf32> -> vector<8x256xf32>
    %182 = arith.index_cast %178 : i32 to index
    %c0_57 = arith.constant 0 : index
    %183 = vector.load %arg7[%182, %c0_57] : memref<72x256xf32, #tpu.memory_space<vmem>>, vector<8x256xf32>
    %184 = arith.addf %181, %183 : vector<8x256xf32>
    %185 = arith.negf %184 : vector<8x256xf32>
    %186 = math.exp %185 : vector<8x256xf32>
    %cst_58 = arith.constant 1.000000e+00 : f32
    %187 = vector.broadcast %cst_58 : f32 to vector<8x256xf32>
    %188 = arith.addf %187, %186 : vector<8x256xf32>
    %189 = arith.divf %187, %188 : vector<8x256xf32>
    %190 = math.tanh %184 : vector<8x256xf32>
    %191 = vector.extract_strided_slice %189 {offsets = [0, 0], sizes = [8, 64], strides = [1, 1]} : vector<8x256xf32> to vector<8x64xf32>
    %192 = vector.extract_strided_slice %189 {offsets = [0, 64], sizes = [8, 64], strides = [1, 1]} : vector<8x256xf32> to vector<8x64xf32>
    %193 = vector.extract_strided_slice %190 {offsets = [0, 128], sizes = [8, 64], strides = [1, 1]} : vector<8x256xf32> to vector<8x64xf32>
    %194 = vector.extract_strided_slice %189 {offsets = [0, 192], sizes = [8, 64], strides = [1, 1]} : vector<8x256xf32> to vector<8x64xf32>
    %195 = arith.mulf %192, %173 : vector<8x64xf32>
    %196 = arith.mulf %191, %193 : vector<8x64xf32>
    %197 = arith.addf %195, %196 : vector<8x64xf32>
    %198 = math.tanh %197 : vector<8x64xf32>
    %199 = arith.mulf %194, %198 : vector<8x64xf32>
    %c7_i32 = arith.constant 7 : i32
    %c1_i32_59 = arith.constant 1 : i32
    %200 = arith.addi %c7_i32, %c1_i32_59 : i32
    %c8_i32_60 = arith.constant 8 : i32
    %201 = arith.muli %200, %c8_i32_60 : i32
    %202 = tpu.assume_multiple %201, 8 : i32
    %203 = arith.truncf %199 : vector<8x64xf32> to vector<8x64xbf16>
    %c0_61 = arith.constant 0 : index
    %c0_62 = arith.constant 0 : index
    %204 = vector.load %arg3[%c0_61, %c0_62] : memref<64x256xbf16, #tpu.memory_space<vmem>>, vector<64x256xbf16>
    %cst_63 = arith.constant dense<0.000000e+00> : vector<8x256xf32>
    %205 = tpu.matmul %203, %204, %cst_63 {dimension_numbers = #tpu.dot_dimension_numbers<[1], [0], [0], [1], [0, 0, 1, 1], [], []>} : vector<8x64xbf16>, vector<64x256xbf16>, vector<8x256xf32> -> vector<8x256xf32>
    %206 = arith.index_cast %202 : i32 to index
    %c0_64 = arith.constant 0 : index
    %207 = vector.load %arg7[%206, %c0_64] : memref<72x256xf32, #tpu.memory_space<vmem>>, vector<8x256xf32>
    %208 = arith.addf %205, %207 : vector<8x256xf32>
    %209 = arith.negf %208 : vector<8x256xf32>
    %210 = math.exp %209 : vector<8x256xf32>
    %cst_65 = arith.constant 1.000000e+00 : f32
    %211 = vector.broadcast %cst_65 : f32 to vector<8x256xf32>
    %212 = arith.addf %211, %210 : vector<8x256xf32>
    %213 = arith.divf %211, %212 : vector<8x256xf32>
    %214 = math.tanh %208 : vector<8x256xf32>
    %215 = vector.extract_strided_slice %213 {offsets = [0, 0], sizes = [8, 64], strides = [1, 1]} : vector<8x256xf32> to vector<8x64xf32>
    %216 = vector.extract_strided_slice %213 {offsets = [0, 64], sizes = [8, 64], strides = [1, 1]} : vector<8x256xf32> to vector<8x64xf32>
    %217 = vector.extract_strided_slice %214 {offsets = [0, 128], sizes = [8, 64], strides = [1, 1]} : vector<8x256xf32> to vector<8x64xf32>
    %218 = vector.extract_strided_slice %213 {offsets = [0, 192], sizes = [8, 64], strides = [1, 1]} : vector<8x256xf32> to vector<8x64xf32>
    %219 = arith.mulf %216, %197 : vector<8x64xf32>
    %220 = arith.mulf %215, %217 : vector<8x64xf32>
    %221 = arith.addf %219, %220 : vector<8x64xf32>
    %222 = math.tanh %221 : vector<8x64xf32>
    %223 = arith.mulf %218, %222 : vector<8x64xf32>
    %c8_i32_66 = arith.constant 8 : i32
    %224 = vector.extract_strided_slice %223 {offsets = [0, 32], sizes = [8, 32], strides = [1, 1]} : vector<8x64xf32> to vector<8x32xf32>
    %cst_67 = arith.constant 0.000000e+00 : f32
    %225 = vector.broadcast %cst_67 : f32 to vector<8x32xf32>
    %226 = arith.maximumf %224, %225 : vector<8x32xf32>
    %c0_68 = arith.constant 0 : index
    %c0_69 = arith.constant 0 : index
    %227 = vector.load %arg4[%c0_68, %c0_69] : memref<1x32xf32, #tpu.memory_space<vmem>>, vector<1x32xf32>
    %228 = vector.broadcast %227 : vector<1x32xf32> to vector<8x32xf32>
    %229 = arith.mulf %226, %228 : vector<8x32xf32>
    %cst_70 = arith.constant dense<0.000000e+00> : vector<8xf32>
    %230 = vector.multi_reduction <add>, %229, %cst_70 [1] : vector<8x32xf32> to vector<8xf32>
    %231 = vector.shape_cast %230 : vector<8xf32> to vector<8x1xf32>
    %c0_71 = arith.constant 0 : index
    %c0_72 = arith.constant 0 : index
    %232 = memref.load %arg5[%c0_71, %c0_72] : memref<1x1xf32, #tpu.memory_space<smem>>
    %233 = vector.broadcast %232 : f32 to vector<8x1xf32>
    %234 = arith.addf %231, %233 : vector<8x1xf32>
    %235 = arith.negf %234 : vector<8x1xf32>
    %236 = math.exp %235 : vector<8x1xf32>
    %cst_73 = arith.constant 1.000000e+00 : f32
    %237 = vector.broadcast %cst_73 : f32 to vector<8x1xf32>
    %238 = arith.addf %237, %236 : vector<8x1xf32>
    %239 = arith.divf %237, %238 : vector<8x1xf32>
    %c0_74 = arith.constant 0 : index
    %c0_75 = arith.constant 0 : index
    %240 = vector.load %arg6[%c0_74, %c0_75] : memref<8x1xf32, #tpu.memory_space<vmem>>, vector<8x1xf32>
    tpu.vector_store %arg6[%c0_74, %c0_75], %239 {strides = array<i32>} : memref<8x1xf32, #tpu.memory_space<vmem>>, vector<8x1xf32>,
    return
  }
}

</mosaic_0001>

<bundles_post_ra>
// kernel: tpu_custom_call.1
= control target key start
LH: loop header
LB: loop body
LE: loop exit
PB: predicated region body
PF: predicated region fallthrough
CT: control target
= control target key end

     0   :  { %v1086_v1 = vmov 0   ;;  %vm63_vm0 = vcmask 130048   ;;  %v43_v6 = vlaneseq  ;;  %v1088_v26 = vmov 0.0   ;;  %s1089_s11 = smov 96   ;;  %s1377_s1 = inlined_call_operand.vmem [shape: bf16[16,256], index: 1, kind: input, shape index: {}]   ;;  %s1378_s0 = inlined_call_operand.vmem [shape: f32[72,16], index: 0, kind: input, shape index: {}]   ;;  %s1379_s2 = inlined_call_operand.vmem [shape: f32[1,256], index: 2, kind: input, shape index: {}]   ;;  %s1380_s3 = inlined_call_operand.vmem [shape: bf16[64,256], index: 3, kind: input, shape index: {}]   ;;  %s1381_s4 = inlined_call_operand.vmem [shape: f32[1,32], index: 4, kind: input, shape index: {}]   ;;  %s1382_s5 = inlined_call_operand.<no memory space> [shape: f32[1,1], index: 5, kind: input, shape index: {}]   ;;  %s1383_s6 = inlined_call_operand.vmem [shape: f32[8,1], index: 6, kind: output, shape index: {}]  }
   0x1   :  { %v959_v0 = vld [vmem:[%s1377_s1 + $0x4] ss:$8 sps:$4 sm:$0xff]   ;;  %111 = vmatprep.mubr.bf16.mxu0 %v1086_v1  ;;  %131 = vmatprep.mubr.bf16.mxu1 %v1086_v1  ;;  %v961_v2 = vld [vmem:[%s1377_s1] ss:$8 sps:$4 sm:$0xff]   ;;  %v31_v33 = vld [vmem:[%s1378_s0 + $0x30] sm:$0xff]  ;;  %vm270_vm2 = vcmask 523264  }
   0x2   :  { %v25_v3 = vld [vmem:[%s1378_s0] sm:$0xff]  ;;  %v26_v4 = vld [vmem:[%s1378_s0 + $0x8] sm:$0xff]  ;;  %79 = vmatprep.subr.bf16.mxu0 %v959_v0  ;;  %948 = vmatprep.subr.bf16.mxu1 %v959_v0  ;;  %v44_v7 = vshrl.u32 %v43_v6, 7  ;;  %v179_v22 = vand.u32 127, %v43_v6  ;;  %v32_v34 = vld [vmem:[%s1378_s0 + $0x38] sm:$0xff]  ;;  %vm877_vm3 = vcmask 261120  }
   0x3   :  { %v34_v5 = vpack.c.bf16 %v26_v4, %v25_v3  ;;  %80 = vmatpush1.bf16.msra.mxu0 %v961_v2  ;;  %949 = vmatpush1.bf16.msra.mxu1 %v961_v2  ;;  %v41_v9 = vld [vmem:[%s1379_s2] sm:$0x3]  ;;  %s1087_s2 = smov 64   ;;  %v30_v29 = vld [vmem:[%s1378_s0 + $0x28] sm:$0xff]  ;;  %v1184_v35 = vld [vmem:[%s1380_s3 + $0x14] ss:$8 sps:$4 sm:$0xff]   ;;  %v37_v38 = vpack.c.bf16 %v32_v34, %v31_v33 }
   0x4   :  { %v45_v8 = vsub.s32 0, %v44_v7  ;;  %v49_v17 = vsub.s32 1, %v44_v7  ;;  %vm180_vm1 = vcmp.lt.s32.totalorder %v179_v22, 32  ;;  %v29_v28 = vld [vmem:[%s1378_s0 + $0x20] sm:$0xff]  ;;  %v1191_v36 = vld [vmem:[%s1380_s3 + $0x10] ss:$8 sps:$4 sm:$0xff]  }
   0x5   :  { %v911_v27 = vsel %vm180_vm1, 1.0, %v1088_v26  ;;  %v36_v30 = vpack.c.bf16 %v30_v29, %v29_v28  ;;  %v1166_v31 = vld [vmem:[%s1380_s3 + $0x4] ss:$8 sps:$4 sm:$0xff]   ;;  %v1171_v32 = vld [vmem:[%s1380_s3] ss:$8 sps:$4 sm:$0xff]   ;;  %vm890_vm4 = vcmask 7168  }
   0x6   :  { %906 = vmatmul.mubr.msk.bf16.vlgmr.msra.gmra.mrb[0].mxu0 %vm63_vm0, %v34_v5  ;;  %v1145_v10 = vrot.slane %v41_v9, %v45_v8  ;;  %v1152_v18 = vrot.slane %v41_v9, %v49_v17  ;;  %274 = vmatprep.subr.bf16.mxu1 %v1166_v31  ;;  %v1197_v37 = vld [vmem:[%s1380_s3 + $0x24] ss:$8 sps:$4 sm:$0xff]   ;;  %v1206_v39 = vld [vmem:[%s1380_s3 + $0x20] ss:$8 sps:$4 sm:$0xff]   ;;  %v1212_v40 = vld [vmem:[%s1380_s3 + $0x34] ss:$8 sps:$4 sm:$0xff]  }
   0x7   :  { %121 = vmatprep.mubr.bf16.mxu0 %v1086_v1  ;;  %908 = vmatmul.mubr.msk.bf16.vlgmr.msra.gmra.mrb[0].mxu1 %vm63_vm0, %v36_v30  ;;  %v33_v41 = vld [vmem:[%s1378_s0 + $0x40] sm:$0xff]  ;;  %v1225_v42 = vld [vmem:[%s1380_s3 + $0x30] ss:$8 sps:$4 sm:$0xff]  }
   0x8   :  { %275 = vmatpush1.bf16.msra.mxu1 %v1171_v32  ;;  %141 = vmatprep.mubr.bf16.mxu1 %v1086_v1  ;;  %v38_v43 = vpack.c.bf16 %v33_v41, %v33_v41 }
   0x9   :  { %276 = vmatprep.subr.bf16.mxu1 %v1184_v35  ;;  %424 = vmatprep.subr.bf16.mxu0 %v1166_v31 }
   0xa   :  { %425 = vmatpush1.bf16.msra.mxu0 %v1171_v32 }
   0xb   :  { %426 = vmatprep.subr.bf16.mxu0 %v1184_v35 }
   0xc   :  { %277 = vmatpush1.bf16.msra.mxu1 %v1191_v36 }
   0xd   :  { %278 = vmatprep.subr.bf16.mxu1 %v1197_v37 }
   0xe   :  { %427 = vmatpush1.bf16.msra.mxu0 %v1191_v36 }
   0xf   :  { %909 = vmatmul.mubr.msk.bf16.gmra.mrb[4].mxu1 %vm63_vm0, %v37_v38  ;;  %428 = vmatprep.subr.bf16.mxu0 %v1197_v37 }
  0x10   :  { %151 = vmatprep.mubr.bf16.mxu1 %v1086_v1  ;;  %279 = vmatpush1.bf16.msra.mxu1 %v1206_v39 }
  0x11   :  { %280 = vmatprep.subr.bf16.mxu1 %v1212_v40 }
  0x12   :  { %429 = vmatpush1.bf16.msra.mxu0 %v1206_v39 }
  0x13   :  { %430 = vmatprep.subr.bf16.mxu0 %v1212_v40 }
  0x14   :  { %281 = vmatpush1.bf16.msra.mxu1 %v1225_v42 }
  0x15   :  { %349 = vmatprep.subr.bf16.mxu1 %v1166_v31 }
  0x16   :  { %431 = vmatpush1.bf16.msra.mxu0 %v1225_v42 }
  0x17   :  { %910 = vmatmul.mubr.msk.bf16.gmra.mrb[8].mxu1 %vm63_vm0, %v38_v43  ;;  %574 = vmatprep.subr.bf16.mxu0 %v1166_v31 }
  0x18   :  { %306 = vmatprep.mubr.bf16.mxu1 %v1086_v1 }
  0xd9   :  { %v113_v11 = vpop.f32.mrb[0].mxu0 }
  0xda   :  { %v114_v12 = vadd.f32 %v113_v11, %v1145_v10  ;;  %v115_v13 = vpop.f32.mrb[1].mxu0  ;;  %v1237_v56 = vpop.f32.mrb[0].mxu1 }
  0xdb   :  { %v1148_v14 = vpop.f32.mrb[2].mxu0  ;;  %v116_v19 = vadd.f32 %v115_v13, %v1152_v18  ;;  %v1239_v57 = vpop.f32.mrb[1].mxu1 }
  0xdc   :  { %v912_v15 = vmul.f32 -1.442695, %v114_v12  ;;  %v1150_v16 = vpop.f32.mrb[3].mxu0  ;;  %v1241_v58 = vpop.f32.mrb[2].mxu1  ;;  %v118_v6 = vadd.f32 %v1148_v14, %v1145_v10 }
  0xdd   :  { %v913_v44 = vmul.f32 -1.442695, %v116_v19  ;;  %v1243_v59 = vpop.f32.mrb[3].mxu1  ;;  %v120_v7 = vadd.f32 %v1150_v16, %v1152_v18  ;;  %v27_v16 = vld [vmem:[%s1378_s0 + $0x10] sm:$0xff] }
  0xde   :  { %974 = vpow2.f32 %v912_v15 }
  0xdf   :  { %976 = vtanh.f32 %v116_v19 }
  0xe2   :  { %v1245_v60 = vpop.f32.mrb[4].mxu1 }
  0xe3   :  { %v1247_v61 = vpop.f32.mrb[5].mxu1 }
  0xe4   :  { %v1249_v62 = vpop.f32.mrb[6].mxu1 }
  0xe5   :  { %v1251_v63 = vpop.f32.mrb[7].mxu1 }
  0xe8   :  { %v975_v20 = vpop.eup %974 }
  0xe9   :  { %v191_v21 = vadd.f32 1.0, %v975_v20  ;;  %v977_v23 = vpop.eup %976 }
  0xea   :  { %v1253_v0 = vpop.f32.mrb[8].mxu1 }
  0xeb   :  { %978 = vrcp.f32 %v191_v21  ;;  %v1255_v2 = vpop.f32.mrb[9].mxu1 }
  0xec   :  { %980 = vpow2.f32 %v913_v44  ;;  %v157_v3 = vpop.f32.mrb[10].mxu1 }
  0xed   :  { %v158_v4 = vpop.f32.mrb[11].mxu1 }
  0xf5   :  { %v979_v24 = vpop.eup %978 }
  0xf6   :  { %v199_v25 = vmul.f32 %v979_v24, %v977_v23  ;;  %v981_v45 = vpop.eup %980  ;;  %v198_v47 = vmul.f32 0.0, %v979_v24 }
  0xf7   :  { %v192_v46 = vadd.f32 1.0, %v981_v45 }
  0xf8   :  { %201 = vrot.lane.b32.xlu0 %v199_v25, %s1087_s2  ;;  %v28_v25 = vld [vmem:[%s1378_s0 + $0x18] sm:$0xff] }
  0xf9   :  { %982 = vrcp.f32 %v192_v46  ;;  %v35_v26 = vpack.c.bf16 %v28_v25, %v27_v16 }
  0xfb   :  { %907 = vmatmul.mubr.msk.bf16.gmra.mrb[4].mxu0 %vm63_vm0, %v35_v26 }
  0xfc   :  { %208 = vrot.lane.b32.xlu0 %v911_v27, %s1087_s2  ;;  %456 = vmatprep.mubr.bf16.mxu0 %v1086_v1 }
 0x103   :  { %v983_v50 = vpop.eup %982 }
 0x16a   :  { %v202_v48 = vpop.permute.xlu0 %201 }
 0x16b   :  { %v204_v49 = vadd.f32 %v202_v48, %v198_v47 }
 0x16d   :  { %984 = vtanh.f32 %v204_v49 }
 0x16e   :  { %v209_v53 = vpop.permute.xlu0 %208 }
 0x16f   :  { %v212_v22 = vmul.f32 %v209_v53, %v204_v49 }
 0x177   :  { %v985_v51 = vpop.eup %984 }
 0x178   :  { %v206_v52 = vmul.f32 %v985_v51, %v983_v50 }
 0x17a   :  { %v211_v54 = vmul.f32 %v209_v53, %v206_v52 }
 0x17c   :  { %v213_v55 = vpack.c.bf16 %v211_v54, %v211_v54 }
 0x17e   :  { %228 = vrot.lane.b32.xlu1 %v213_v55, %s1087_s2 }
 0x1ce   :  { %v123_v44 = vpop.f32.mrb[4].mxu0 }
 0x1cf   :  { %v125_v45 = vpop.f32.mrb[5].mxu0  ;;  %v124_v49 = vadd.f32 %v123_v44, %v1145_v10 }
 0x1d0   :  { %v127_v46 = vpop.f32.mrb[6].mxu0  ;;  %v126_v50 = vadd.f32 %v125_v45, %v1152_v18 }
 0x1d1   :  { %v129_v47 = vpop.f32.mrb[7].mxu0 }
 0x1d2   :  { %v130_v16 = vadd.f32 %v129_v47, %v1152_v18 }
 0x1f0   :  { %v229_v5 = vpop.permute.xlu1 %228 }
 0x1f1   :  { %922 = vmatmul.mubr.msk.bf16.vlgmr.msra.gmra.mrb[12].mxu1 %vm270_vm2, %v229_v5 }
 0x1f2   :  { %350 = vmatpush1.bf16.msra.mxu1 %v1171_v32  ;;  %381 = vmatprep.mubr.bf16.mxu1 %v1086_v1 }
 0x1f3   :  { %351 = vmatprep.subr.bf16.mxu1 %v1184_v35 }
 0x1f6   :  { %352 = vmatpush1.bf16.msra.mxu1 %v1191_v36 }
 0x1f7   :  { %353 = vmatprep.subr.bf16.mxu1 %v1197_v37 }
 0x1fa   :  { %354 = vmatpush1.bf16.msra.mxu1 %v1206_v39 }
 0x1fb   :  { %355 = vmatprep.subr.bf16.mxu1 %v1212_v40 }
 0x1fe   :  { %356 = vmatpush1.bf16.msra.mxu1 %v1225_v42 }
 0x1ff   :  { %499 = vmatprep.subr.bf16.mxu1 %v1166_v31 }
 0x2c4   :  { %v308_v8 = vpop.f32.mrb[12].mxu1 }
 0x2c5   :  { %v309_v9 = vadd.f32 %v308_v8, %v118_v6  ;;  %v310_v11 = vpop.f32.mrb[13].mxu1 }
 0x2c6   :  { %v311_v12 = vadd.f32 %v310_v11, %v120_v7  ;;  %v312_v13 = vpop.f32.mrb[14].mxu1 }
 0x2c7   :  { %v923_v15 = vmul.f32 -1.442695, %v309_v9  ;;  %v313_v17 = vpop.f32.mrb[15].mxu1 }
 0x2c8   :  { %v924_v27 = vmul.f32 -1.442695, %v311_v12 }
 0x2c9   :  { %986 = vpow2.f32 %v923_v15 }
 0x2ca   :  { %988 = vtanh.f32 %v311_v12 }
 0x2d3   :  { %v987_v19 = vpop.eup %986 }
 0x2d4   :  { %v321_v20 = vadd.f32 1.0, %v987_v19  ;;  %v989_v21 = vpop.eup %988 }
 0x2d6   :  { %990 = vrcp.f32 %v321_v20 }
 0x2d7   :  { %992 = vpow2.f32 %v924_v27 }
 0x2e0   :  { %v991_v23 = vpop.eup %990 }
 0x2e1   :  { %v329_v24 = vmul.f32 %v991_v23, %v989_v21  ;;  %v328_v14 = vmul.f32 %v991_v23, %v212_v22  ;;  %v993_v28 = vpop.eup %992 }
 0x2e2   :  { %v322_v29 = vadd.f32 1.0, %v993_v28 }
 0x2e3   :  { %331 = vrot.lane.b32.xlu1 %v329_v24, %s1087_s2 }
 0x2e4   :  { %994 = vrcp.f32 %v322_v29 }
 0x2ee   :  { %v995_v34 = vpop.eup %994 }
 0x355   :  { %v332_v30 = vpop.permute.xlu1 %331 }
 0x356   :  { %v334_v33 = vadd.f32 %v332_v30, %v328_v14  ;;  %v128_v14 = vadd.f32 %v127_v46, %v1145_v10 }
 0x358   :  { %996 = vtanh.f32 %v334_v33 }
 0x362   :  { %v997_v38 = vpop.eup %996 }
 0x363   :  { %v336_v41 = vmul.f32 %v997_v38, %v995_v34 }
 0x365   :  { %v337_v43 = vpack.c.bf16 %v336_v41, %v336_v41 }
 0x367   :  { %344 = vrot.lane.b32.xlu0 %v337_v43, %s1087_s2 }
 0x3d9   :  { %v345_v48 = vpop.permute.xlu0 %344 }
 0x3da   :  { %925 = vmatmul.mubr.msk.bf16.vlgmr.msra.gmra.mrb[16].mxu1 %vm270_vm2, %v345_v48 }
 0x3db   :  { %500 = vmatpush1.bf16.msra.mxu1 %v1171_v32  ;;  %531 = vmatprep.mubr.bf16.mxu1 %v1086_v1 }
 0x3dc   :  { %501 = vmatprep.subr.bf16.mxu1 %v1184_v35 }
 0x3df   :  { %502 = vmatpush1.bf16.msra.mxu1 %v1191_v36 }
 0x3e0   :  { %503 = vmatprep.subr.bf16.mxu1 %v1197_v37 }
 0x3e3   :  { %504 = vmatpush1.bf16.msra.mxu1 %v1206_v39 }
 0x3e4   :  { %505 = vmatprep.subr.bf16.mxu1 %v1212_v40 }
 0x3e7   :  { %506 = vmatpush1.bf16.msra.mxu1 %v1225_v42 }
 0x3e8   :  { %649 = vmatprep.subr.bf16.mxu1 %v1166_v31 }
 0x4ad   :  { %v383_v51 = vpop.f32.mrb[16].mxu1 }
 0x4ae   :  { %v384_v52 = vadd.f32 %v383_v51, %v124_v49  ;;  %v385_v53 = vpop.f32.mrb[17].mxu1 }
 0x4af   :  { %v386_v54 = vadd.f32 %v385_v53, %v126_v50  ;;  %v387_v55 = vpop.f32.mrb[18].mxu1 }
 0x4b0   :  { %v926_v3 = vmul.f32 -1.442695, %v384_v52  ;;  %v388_v4 = vpop.f32.mrb[19].mxu1 }
 0x4b1   :  { %v927_v11 = vmul.f32 -1.442695, %v386_v54  ;;  %v136_v4 = vadd.f32 %v1239_v57, %v1152_v18 }
 0x4b2   :  { %998 = vpow2.f32 %v926_v3  ;;  %v134_v3 = vadd.f32 %v1237_v56, %v1145_v10 }
 0x4b3   :  { %1000 = vtanh.f32 %v386_v54 }
 0x4bc   :  { %v999_v5 = vpop.eup %998 }
 0x4bd   :  { %v396_v6 = vadd.f32 1.0, %v999_v5  ;;  %v1001_v7 = vpop.eup %1000 }
 0x4bf   :  { %1002 = vrcp.f32 %v396_v6 }
 0x4c0   :  { %1004 = vpow2.f32 %v927_v11 }
 0x4c9   :  { %v1003_v8 = vpop.eup %1002 }
 0x4ca   :  { %v404_v9 = vmul.f32 %v1003_v8, %v1001_v7  ;;  %v1005_v12 = vpop.eup %1004  ;;  %v403_v15 = vmul.f32 %v1003_v8, %v334_v33 }
 0x4cb   :  { %v397_v13 = vadd.f32 1.0, %v1005_v12 }
 0x4cc   :  { %406 = vrot.lane.b32.xlu1 %v404_v9, %s1087_s2 }
 0x4cd   :  { %1006 = vrcp.f32 %v397_v13 }
 0x4d7   :  { %v1007_v20 = vpop.eup %1006 }
 0x53e   :  { %v407_v17 = vpop.permute.xlu1 %406 }
 0x53f   :  { %v409_v19 = vadd.f32 %v407_v17, %v403_v15 }
 0x541   :  { %1008 = vtanh.f32 %v409_v19 }
 0x54b   :  { %v1009_v21 = vpop.eup %1008 }
 0x54c   :  { %v411_v22 = vmul.f32 %v1009_v21, %v1007_v20 }
 0x54e   :  { %v412_v23 = vpack.c.bf16 %v411_v22, %v411_v22 }
 0x550   :  { %419 = vrot.lane.b32.xlu0 %v412_v23, %s1087_s2 }
 0x5c2   :  { %v420_v24 = vpop.permute.xlu0 %419 }
 0x5c3   :  { %928 = vmatmul.mubr.msk.bf16.vlgmr.msra.gmra.mrb[8].mxu0 %vm270_vm2, %v420_v24 }
 0x5c4   :  { %575 = vmatpush1.bf16.msra.mxu0 %v1171_v32  ;;  %606 = vmatprep.mubr.bf16.mxu0 %v1086_v1 }
 0x5c5   :  { %576 = vmatprep.subr.bf16.mxu0 %v1184_v35 }
 0x5c8   :  { %577 = vmatpush1.bf16.msra.mxu0 %v1191_v36 }
 0x5c9   :  { %578 = vmatprep.subr.bf16.mxu0 %v1197_v37 }
 0x5cc   :  { %579 = vmatpush1.bf16.msra.mxu0 %v1206_v39 }
 0x5cd   :  { %580 = vmatprep.subr.bf16.mxu0 %v1212_v40 }
 0x5d0   :  { %581 = vmatpush1.bf16.msra.mxu0 %v1225_v42 }
 0x5d1   :  { %724 = vmatprep.subr.bf16.mxu0 %v1166_v31 }
 0x696   :  { %v458_v25 = vpop.f32.mrb[8].mxu0 }
 0x697   :  { %v459_v26 = vadd.f32 %v458_v25, %v128_v14  ;;  %v460_v27 = vpop.f32.mrb[9].mxu0 }
 0x698   :  { %v461_v28 = vadd.f32 %v460_v27, %v130_v16  ;;  %v462_v29 = vpop.f32.mrb[10].mxu0 }
 0x699   :  { %v929_v30 = vmul.f32 -1.442695, %v459_v26  ;;  %v463_v33 = vpop.f32.mrb[11].mxu0  ;;  %v140_v29 = vadd.f32 %v1243_v59, %v1152_v18 }
 0x69a   :  { %v930_v45 = vmul.f32 -1.442695, %v461_v28 }
 0x69b   :  { %1010 = vpow2.f32 %v929_v30 }
 0x69c   :  { %1012 = vtanh.f32 %v461_v28  ;;  %v138_v28 = vadd.f32 %v1241_v58, %v1145_v10 }
 0x6a5   :  { %v1011_v34 = vpop.eup %1010 }
 0x6a6   :  { %v471_v38 = vadd.f32 1.0, %v1011_v34  ;;  %v1013_v41 = vpop.eup %1012 }
 0x6a8   :  { %1014 = vrcp.f32 %v471_v38 }
 0x6a9   :  { %1016 = vpow2.f32 %v930_v45 }
 0x6b2   :  { %v1015_v43 = vpop.eup %1014 }
 0x6b3   :  { %v479_v44 = vmul.f32 %v1015_v43, %v1013_v41  ;;  %v1017_v46 = vpop.eup %1016  ;;  %v478_v48 = vmul.f32 %v1015_v43, %v409_v19 }
 0x6b4   :  { %v472_v47 = vadd.f32 1.0, %v1017_v46 }
 0x6b5   :  { %481 = vrot.lane.b32.xlu1 %v479_v44, %s1087_s2 }
 0x6b6   :  { %1018 = vrcp.f32 %v472_v47 }
 0x6c0   :  { %v1019_v51 = vpop.eup %1018 }
 0x727   :  { %v482_v49 = vpop.permute.xlu1 %481 }
 0x728   :  { %v484_v50 = vadd.f32 %v482_v49, %v478_v48 }
 0x72a   :  { %1020 = vtanh.f32 %v484_v50 }
 0x734   :  { %v1021_v52 = vpop.eup %1020 }
 0x735   :  { %v486_v53 = vmul.f32 %v1021_v52, %v1019_v51 }
 0x737   :  { %v487_v54 = vpack.c.bf16 %v486_v53, %v486_v53 }
 0x739   :  { %494 = vrot.lane.b32.xlu0 %v487_v54, %s1087_s2 }
 0x7ab   :  { %v495_v55 = vpop.permute.xlu0 %494 }
 0x7ac   :  { %931 = vmatmul.mubr.msk.bf16.vlgmr.msra.gmra.mrb[20].mxu1 %vm270_vm2, %v495_v55 }
 0x7ad   :  { %650 = vmatpush1.bf16.msra.mxu1 %v1171_v32  ;;  %681 = vmatprep.mubr.bf16.mxu1 %v1086_v1 }
 0x7ae   :  { %651 = vmatprep.subr.bf16.mxu1 %v1184_v35 }
 0x7b1   :  { %652 = vmatpush1.bf16.msra.mxu1 %v1191_v36 }
 0x7b2   :  { %653 = vmatprep.subr.bf16.mxu1 %v1197_v37 }
 0x7b5   :  { %654 = vmatpush1.bf16.msra.mxu1 %v1206_v39 }
 0x7b6   :  { %655 = vmatprep.subr.bf16.mxu1 %v1212_v40 }
 0x7b9   :  { %656 = vmatpush1.bf16.msra.mxu1 %v1225_v42 }
 0x87f   :  { %v533_v5 = vpop.f32.mrb[20].mxu1 }
 0x880   :  { %v534_v6 = vadd.f32 %v533_v5, %v134_v3  ;;  %v535_v7 = vpop.f32.mrb[21].mxu1  ;;  %v144_v5 = vadd.f32 %v1245_v60, %v1145_v10 }
 0x881   :  { %v536_v8 = vadd.f32 %v535_v7, %v136_v4  ;;  %v537_v9 = vpop.f32.mrb[22].mxu1 }
 0x882   :  { %v932_v11 = vmul.f32 -1.442695, %v534_v6  ;;  %v538_v12 = vpop.f32.mrb[23].mxu1  ;;  %v146_v6 = vadd.f32 %v1247_v61, %v1152_v18 }
 0x883   :  { %v933_v56 = vmul.f32 -1.442695, %v536_v8 }
 0x884   :  { %1022 = vpow2.f32 %v932_v11 }
 0x885   :  { %1024 = vtanh.f32 %v536_v8 }
 0x88e   :  { %v1023_v13 = vpop.eup %1022 }
 0x88f   :  { %v546_v15 = vadd.f32 1.0, %v1023_v13  ;;  %v1025_v17 = vpop.eup %1024 }
 0x891   :  { %1026 = vrcp.f32 %v546_v15 }
 0x892   :  { %1028 = vpow2.f32 %v933_v56 }
 0x89b   :  { %v1027_v19 = vpop.eup %1026 }
 0x89c   :  { %v554_v20 = vmul.f32 %v1027_v19, %v1025_v17  ;;  %v1029_v57 = vpop.eup %1028  ;;  %v553_v22 = vmul.f32 %v1027_v19, %v484_v50 }
 0x89d   :  { %v547_v21 = vadd.f32 1.0, %v1029_v57 }
 0x89e   :  { %556 = vrot.lane.b32.xlu1 %v554_v20, %s1087_s2 }
 0x89f   :  { %1030 = vrcp.f32 %v547_v21 }
 0x8a9   :  { %v1031_v14 = vpop.eup %1030 }
 0x910   :  { %v557_v23 = vpop.permute.xlu1 %556 }
 0x911   :  { %v559_v24 = vadd.f32 %v557_v23, %v553_v22 }
 0x913   :  { %1032 = vtanh.f32 %v559_v24 }
 0x91d   :  { %v1033_v16 = vpop.eup %1032 }
 0x91e   :  { %v561_v25 = vmul.f32 %v1033_v16, %v1031_v14 }
 0x920   :  { %v562_v26 = vpack.c.bf16 %v561_v25, %v561_v25 }
 0x922   :  { %569 = vrot.lane.b32.xlu0 %v562_v26, %s1087_s2 }
 0x994   :  { %v570_v27 = vpop.permute.xlu0 %569 }
 0x995   :  { %934 = vmatmul.mubr.msk.bf16.vlgmr.msra.gmra.mrb[12].mxu0 %vm270_vm2, %v570_v27 }
 0x996   :  { %725 = vmatpush1.bf16.msra.mxu0 %v1171_v32  ;;  %756 = vmatprep.mubr.bf16.mxu0 %v1086_v1 }
 0x997   :  { %726 = vmatprep.subr.bf16.mxu0 %v1184_v35 }
 0x99a   :  { %727 = vmatpush1.bf16.msra.mxu0 %v1191_v36 }
 0x99b   :  { %728 = vmatprep.subr.bf16.mxu0 %v1197_v37 }
 0x99e   :  { %729 = vmatpush1.bf16.msra.mxu0 %v1206_v39 }
 0x99f   :  { %730 = vmatprep.subr.bf16.mxu0 %v1212_v40 }
 0x9a2   :  { %731 = vmatpush1.bf16.msra.mxu0 %v1225_v42 }
 0x9a3   :  { %799 = vmatprep.subr.bf16.mxu0 %v1166_v31 }
 0xa68   :  { %v608_v30 = vpop.f32.mrb[12].mxu0 }
 0xa69   :  { %v609_v33 = vadd.f32 %v608_v30, %v138_v28  ;;  %v610_v34 = vpop.f32.mrb[13].mxu0  ;;  %v148_v28 = vadd.f32 %v1249_v62, %v1145_v10 }
 0xa6a   :  { %v611_v38 = vadd.f32 %v610_v34, %v140_v29  ;;  %v612_v41 = vpop.f32.mrb[14].mxu0 }
 0xa6b   :  { %v935_v43 = vmul.f32 -1.442695, %v609_v33  ;;  %v613_v44 = vpop.f32.mrb[15].mxu0 }
 0xa6c   :  { %v936_v58 = vmul.f32 -1.442695, %v611_v38 }
 0xa6d   :  { %1034 = vpow2.f32 %v935_v43 }
 0xa6e   :  { %1036 = vtanh.f32 %v611_v38 }
 0xa77   :  { %v1035_v45 = vpop.eup %1034 }
 0xa78   :  { %v621_v46 = vadd.f32 1.0, %v1035_v45  ;;  %v1037_v47 = vpop.eup %1036 }
 0xa7a   :  { %1038 = vrcp.f32 %v621_v46 }
 0xa7b   :  { %1040 = vpow2.f32 %v936_v58 }
 0xa84   :  { %v1039_v31 = vpop.eup %1038 }
 0xa85   :  { %v629_v48 = vmul.f32 %v1039_v31, %v1037_v47  ;;  %v1041_v59 = vpop.eup %1040  ;;  %v628_v50 = vmul.f32 %v1039_v31, %v559_v24 }
 0xa86   :  { %v622_v49 = vadd.f32 1.0, %v1041_v59  ;;  %v946_v59 = vld [vmem:[%s1381_s4] ss:$0 sm:$0xff]  ;;  %s1090_s4 = smov 32  }
 0xa87   :  { %631 = vrot.lane.b32.xlu1 %v629_v48, %s1087_s2 }
 0xa88   :  { %1042 = vrcp.f32 %v622_v49  ;;  %v154_v49 = vadd.f32 %v1253_v0, %v1145_v10 }
 0xa92   :  { %v1043_v53 = vpop.eup %1042 }
 0xaf9   :  { %v632_v51 = vpop.permute.xlu1 %631 }
 0xafa   :  { %v634_v52 = vadd.f32 %v632_v51, %v628_v50  ;;  %v156_v50 = vadd.f32 %v1255_v2, %v1152_v18 }
 0xafc   :  { %1044 = vtanh.f32 %v634_v52 }
 0xb06   :  { %v1045_v54 = vpop.eup %1044 }
 0xb07   :  { %v636_v55 = vmul.f32 %v1045_v54, %v1043_v53 }
 0xb09   :  { %v637_v3 = vpack.c.bf16 %v636_v55, %v636_v55 }
 0xb0b   :  { %644 = vrot.lane.b32.xlu0 %v637_v3, %s1087_s2 }
 0xb7d   :  { %v645_v4 = vpop.permute.xlu0 %644 }
 0xb7e   :  { %937 = vmatmul.mubr.msk.bf16.vlgmr.msra.gmra.mrb[24].mxu1 %vm270_vm2, %v645_v4 }
 0xc51   :  { %v683_v7 = vpop.f32.mrb[24].mxu1 }
 0xc52   :  { %v684_v8 = vadd.f32 %v683_v7, %v144_v5  ;;  %v685_v9 = vpop.f32.mrb[25].mxu1 }
 0xc53   :  { %v686_v11 = vadd.f32 %v685_v9, %v146_v6  ;;  %v687_v12 = vpop.f32.mrb[26].mxu1 }
 0xc54   :  { %v938_v13 = vmul.f32 -1.442695, %v684_v8  ;;  %v688_v15 = vpop.f32.mrb[27].mxu1 }
 0xc55   :  { %v939_v60 = vmul.f32 -1.442695, %v686_v11 }
 0xc56   :  { %1046 = vpow2.f32 %v938_v13 }
 0xc57   :  { %1048 = vtanh.f32 %v686_v11 }
 0xc60   :  { %v1047_v17 = vpop.eup %1046 }
 0xc61   :  { %v696_v19 = vadd.f32 1.0, %v1047_v17  ;;  %v1049_v20 = vpop.eup %1048 }
 0xc63   :  { %1050 = vrcp.f32 %v696_v19 }
 0xc64   :  { %1052 = vpow2.f32 %v939_v60 }
 0xc6d   :  { %v1051_v56 = vpop.eup %1050 }
 0xc6e   :  { %v704_v57 = vmul.f32 %v1051_v56, %v1049_v20  ;;  %v1053_v61 = vpop.eup %1052  ;;  %v703_v22 = vmul.f32 %v1051_v56, %v634_v52 }
 0xc6f   :  { %v697_v21 = vadd.f32 1.0, %v1053_v61  ;;  %v882_v61 = vstv %s1382_s5 }
 0xc70   :  { %706 = vrot.lane.b32.xlu1 %v704_v57, %s1087_s2 }
 0xc71   :  { %1054 = vrcp.f32 %v697_v21 }
 0xc7b   :  { %v1055_v14 = vpop.eup %1054 }
 0xce2   :  { %v707_v23 = vpop.permute.xlu1 %706 }
 0xce3   :  { %v709_v24 = vadd.f32 %v707_v23, %v703_v22 }
 0xce5   :  { %1056 = vtanh.f32 %v709_v24 }
 0xcef   :  { %v1057_v16 = vpop.eup %1056 }
 0xcf0   :  { %v711_v25 = vmul.f32 %v1057_v16, %v1055_v14 }
 0xcf2   :  { %v712_v26 = vpack.c.bf16 %v711_v25, %v711_v25 }
 0xcf4   :  { %719 = vrot.lane.b32.xlu0 %v712_v26, %s1087_s2 }
 0xd66   :  { %v720_v27 = vpop.permute.xlu0 %719 }
 0xd67   :  { %940 = vmatmul.mubr.msk.bf16.vlgmr.msra.gmra.mrb[16].mxu0 %vm270_vm2, %v720_v27 }
 0xd68   :  { %800 = vmatpush1.bf16.msra.mxu0 %v1171_v32  ;;  %831 = vmatprep.mubr.bf16.mxu0 %v1086_v1  ;;  %v150_v32 = vadd.f32 %v1251_v63, %v1152_v18 }
 0xd69   :  { %801 = vmatprep.subr.bf16.mxu0 %v1184_v35 }
 0xd6c   :  { %802 = vmatpush1.bf16.msra.mxu0 %v1191_v36 }
 0xd6d   :  { %803 = vmatprep.subr.bf16.mxu0 %v1197_v37 }
 0xd70   :  { %804 = vmatpush1.bf16.msra.mxu0 %v1206_v39 }
 0xd71   :  { %805 = vmatprep.subr.bf16.mxu0 %v1212_v40 }
 0xd74   :  { %806 = vmatpush1.bf16.msra.mxu0 %v1225_v42 }
 0xe3a   :  { %v758_v29 = vpop.f32.mrb[16].mxu0 }
 0xe3b   :  { %v759_v1 = vadd.f32 %v758_v29, %v148_v28  ;;  %v760_v30 = vpop.f32.mrb[17].mxu0 }
 0xe3c   :  { %v761_v35 = vadd.f32 %v760_v30, %v150_v32  ;;  %v762_v33 = vpop.f32.mrb[18].mxu0 }
 0xe3d   :  { %v941_v36 = vmul.f32 -1.442695, %v759_v1  ;;  %v763_v34 = vpop.f32.mrb[19].mxu0 }
 0xe3e   :  { %v942_v62 = vmul.f32 -1.442695, %v761_v35 }
 0xe3f   :  { %1058 = vpow2.f32 %v941_v36 }
 0xe40   :  { %1060 = vtanh.f32 %v761_v35 }
 0xe49   :  { %v1059_v37 = vpop.eup %1058 }
 0xe4a   :  { %v771_v39 = vadd.f32 1.0, %v1059_v37  ;;  %v1061_v40 = vpop.eup %1060 }
 0xe4c   :  { %1062 = vrcp.f32 %v771_v39 }
 0xe4d   :  { %1064 = vpow2.f32 %v942_v62 }
 0xe56   :  { %v1063_v42 = vpop.eup %1062 }
 0xe57   :  { %v779_v38 = vmul.f32 %v1063_v42, %v1061_v40  ;;  %v1065_v63 = vpop.eup %1064  ;;  %v778_v43 = vmul.f32 %v1063_v42, %v709_v24 }
 0xe58   :  { %v772_v41 = vadd.f32 1.0, %v1065_v63 }
 0xe59   :  { %781 = vrot.lane.b32.xlu1 %v779_v38, %s1087_s2 }
 0xe5a   :  { %1066 = vrcp.f32 %v772_v41 }
 0xe64   :  { %v1067_v46 = vpop.eup %1066 }
 0xecb   :  { %v782_v44 = vpop.permute.xlu1 %781 }
 0xecc   :  { %v784_v45 = vadd.f32 %v782_v44, %v778_v43 }
 0xece   :  { %1068 = vtanh.f32 %v784_v45 }
 0xed8   :  { %v1069_v47 = vpop.eup %1068 }
 0xed9   :  { %v786_v31 = vmul.f32 %v1069_v47, %v1067_v46 }
 0xedb   :  { %v787_v48 = vpack.c.bf16 %v786_v31, %v786_v31 }
 0xedd   :  { %794 = vrot.lane.b32.xlu0 %v787_v48, %s1087_s2 }
 0xee1   :  { %869 = vrot.lane.b32.xlu0 %v946_v59, %s1089_s11 }
 0xf4f   :  { %v795_v58 = vpop.permute.xlu0 %794 }
 0xf50   :  { %943 = vmatmul.mubr.msk.bf16.vlgmr.msra.gmra.mrb[20].mxu0 %vm270_vm2, %v795_v58 }
 0xf53   :  { %v870_v19 = vpop.permute.xlu0 %869 }
0x1023   :  { %v833_v51 = vpop.f32.mrb[20].mxu0 }
0x1024   :  { %v834_v52 = vadd.f32 %v833_v51, %v154_v49  ;;  %v835_v53 = vpop.f32.mrb[21].mxu0 }
0x1025   :  { %v836_v54 = vadd.f32 %v835_v53, %v156_v50  ;;  %v837_v55 = vpop.f32.mrb[22].mxu0 }
0x1026   :  { %v944_v3 = vmul.f32 -1.442695, %v834_v52  ;;  %v838_v4 = vpop.f32.mrb[23].mxu0 }
0x1027   :  { %v945_v10 = vmul.f32 -1.442695, %v836_v54 }
0x1028   :  { %1070 = vpow2.f32 %v944_v3 }
0x1029   :  { %1072 = vtanh.f32 %v836_v54 }
0x1032   :  { %v1071_v5 = vpop.eup %1070 }
0x1033   :  { %v846_v6 = vadd.f32 1.0, %v1071_v5  ;;  %v1073_v7 = vpop.eup %1072 }
0x1035   :  { %1074 = vrcp.f32 %v846_v6 }
0x1036   :  { %1076 = vpow2.f32 %v945_v10 }
0x103f   :  { %v1075_v8 = vpop.eup %1074 }
0x1040   :  { %v854_v9 = vmul.f32 %v1075_v8, %v1073_v7  ;;  %v1077_v18 = vpop.eup %1076  ;;  %v853_v2 = vmul.f32 %v1075_v8, %v784_v45 }
0x1041   :  { %v847_v0 = vadd.f32 1.0, %v1077_v18 }
0x1042   :  { %856 = vrot.lane.b32.xlu1 %v854_v9, %s1087_s2 }
0x1043   :  { %1078 = vrcp.f32 %v847_v0 }
0x104d   :  { %v1079_v13 = vpop.eup %1078 }
0x10b4   :  { %v857_v11 = vpop.permute.xlu1 %856 }
0x10b5   :  { %v859_v12 = vadd.f32 %v857_v11, %v853_v2 }
0x10b7   :  { %1080 = vtanh.f32 %v859_v12 }
0x10c1   :  { %v1081_v15 = vpop.eup %1080 }
0x10c2   :  { %v861_v17 = vmul.f32 %v1081_v15, %v1079_v13 }
0x10c4   :  { %v862_v20 = vmax.f32 %v861_v17, 0.0 }
0x10c6   :  { %v872_v56 = vmul.f32 %v870_v19, %v862_v20 }
0x10c8   :  { %874 = vrot.lane.b32.xlu1 %v872_v56, %s1090_s4 }
0x113a   :  { %v875_v57 = vpop.permute.xlu1 %874 }
0x113b   :  { %v878_v60 = vsel %vm877_vm3, %v875_v57, 0.0 }
0x113c   :  { %879 = vadd.xlane.f32.xlu0 %v878_v60 }
0x11c9   :  { %v880_v21 = vpop.xlane.xlu0 %879 }
0x11ca   :  { %v883_v22 = vadd.f32 %v882_v61, %v880_v21 }
0x11cc   :  { %v947_v23 = vmul.f32 -1.442695, %v883_v22 }
0x11ce   :  { %1082 = vpow2.f32 %v947_v23 }
0x11d8   :  { %v1083_v24 = vpop.eup %1082 }
0x11d9   :  { %v887_v14 = vadd.f32 1.0, %v1083_v24 }
0x11db   :  { %1084 = vrcp.f32 %v887_v14 }
0x11e5   :  { %v1085_v16 = vpop.eup %1084 }
0x11e6   :  { %891 = vst.msk [vmem:[%s1383_s6] sm:$0xff] %vm890_vm4, %v1085_v16 }

</bundles_post_ra>
